<compile_context>
chip_gen: v7x
topology: tpu7x:2x2x1
jax: 0.10.0
libtpu: 0.0.40
codegen_flags: <defaults>
</compile_context>

<pallas_src>
import jax
import jax.numpy as jnp
from jax.experimental import pallas as pl
from jax.experimental.pallas import tpu as pltpu


def make_fused_double_q_kernel(n_mid, mxu_dtype):
    """Kernel for two fused MLPs: layer0 split (state/action) + n_mid packed layers.

    mxu_dtype is the dtype fed to the MXU (f32 or bf16); accumulation and the
    elementwise epilogue (bias add / ReLU) always run in f32.
    """

    def kernel(s_ref, a_ref, ws_ref, wa_ref, wmid_ref, b_ref, out_ref):
        # Layer 0: state @ W_s + action @ W_a + b0   (== concat(sa) @ W0 + b0)
        s = s_ref[...].astype(mxu_dtype)
        a = a_ref[...].astype(mxu_dtype)
        h = jnp.dot(s, ws_ref[...], preferred_element_type=jnp.float32)
        h = h + jnp.dot(a, wa_ref[...], preferred_element_type=jnp.float32)
        h = jnp.maximum(h + b_ref[0], 0.0)                      # f32 bias + ReLU

        # Remaining layers: block-diagonal fused weights -> both critics at once.
        # Load each layer's weights just-in-time to bound vreg pressure.
        for i in range(n_mid):
            w = wmid_ref[i]                                      # (2H, 2H)
            h = jnp.dot(h.astype(mxu_dtype), w,
                        preferred_element_type=jnp.float32) + b_ref[i + 1]
            if i < n_mid - 1:
                h = jnp.maximum(h, 0.0)                          # ReLU hidden, Identity last

        # Lane-dense writeback of the full slab; q1 in lane 0, q2 in lane 1,
        # remaining lanes are exact zeros.  Wrapper slices the two columns.
        out_ref[...] = h.astype(out_ref.dtype)

    return kernel


def pack_double_q_params(params1, params2, state_dim, action_dim, *,
                         weight_dtype=jnp.float32, min_half_width=64):
    """Pack the two critics' Linear params into 4 fused tensors (done once).

    Weights may be cast to bf16 (MXU inputs); biases stay f32 (epilogue dtype).
    The fused half-width hp is padded so 2*hp is a multiple of 128 lanes.
    """
    ws1, bs1 = list(params1["w"]), list(params1["b"])
    ws2, bs2 = list(params2["w"]), list(params2["b"])
    n_layers = len(ws1)
    assert n_layers >= 2
    d_in = [w.shape[0] for w in ws1]
    d_out = [w.shape[1] for w in ws1]
    # q1/q2 lane placement in the kernel assumes width-1 heads for both critics.
    assert d_out[-1] == 1 and ws2[-1].shape[1] == 1, \
        "Double_Q_Critic packing assumes final out_features == 1 per critic"

    hp = max(max(d_out), min_half_width)          # padded half-width (2*hp % 128 == 0)
    assert (2 * hp) % 128 == 0
    h0 = d_out[0]

    # Layer 0: split rows into state/action parts, fuse nets along out-features.
    ws_f = jnp.zeros((state_dim, 2 * hp), jnp.float32)
    ws_f = ws_f.at[:, :h0].set(ws1[0][:state_dim, :])
    ws_f = ws_f.at[:, h0:2 * h0].set(ws2[0][:state_dim, :])
    wa_f = jnp.zeros((action_dim, 2 * hp), jnp.float32)
    wa_f = wa_f.at[:, :h0].set(ws1[0][state_dim:, :])
    wa_f = wa_f.at[:, h0:2 * h0].set(ws2[0][state_dim:, :])
    b0 = jnp.zeros((1, 1, 2 * hp), jnp.float32)
    b0 = b0.at[0, :, :h0].set(bs1[0]).at[0, :, h0:2 * h0].set(bs2[0])

    # Layers 1..n-1: block-diagonal fused weights, zero off-diagonal (exact).
    n_mid = n_layers - 1
    wmid = jnp.zeros((n_mid, 2 * hp, 2 * hp), jnp.float32)
    bmid = jnp.zeros((n_mid, 1, 2 * hp), jnp.float32)
    for layer in range(1, n_layers):
        ci, co = d_in[layer], d_out[layer]
        blk = jnp.zeros((2 * hp, 2 * hp), jnp.float32)
        blk = blk.at[:ci, :co].set(ws1[layer])
        blk = blk.at[ci:2 * ci, co:2 * co].set(ws2[layer])
        wmid = wmid.at[layer - 1].set(blk)
        bb = jnp.zeros((1, 2 * hp), jnp.float32)
        bb = bb.at[:, :co].set(bs1[layer]).at[:, co:2 * co].set(bs2[layer])
        bmid = bmid.at[layer - 1].set(bb)

    b_all = jnp.concatenate([b0, bmid], axis=0)      # (n_layers, 1, 2*hp), f32
    return {"ws": ws_f.astype(weight_dtype),
            "wa": wa_f.astype(weight_dtype),
            "wmid": wmid.astype(weight_dtype),
            "b": b_all}


def double_q_critic_forward(state, action, packed, *,
                            batch_block=1024, grid_min_blocks=2):
    """Pallas implementation of Double_Q_Critic.forward(state, action) -> (q1, q2)."""
    B, state_dim = state.shape
    action_dim = action.shape[1]
    ws, wa, wmid, b_all = packed["ws"], packed["wa"], packed["wmid"], packed["b"]
    n_mid = wmid.shape[0]
    two_h = ws.shape[1]
    mxu_dtype = ws.dtype
    kernel = make_fused_double_q_kernel(n_mid, mxu_dtype)

    flops = 2 * B * (state_dim + action_dim) * two_h + n_mid * 2 * B * two_h * two_h
    bytes_accessed = (state.dtype.itemsize * state.size
                      + action.dtype.itemsize * action.size
                      + ws.dtype.itemsize * (ws.size + wa.size + wmid.size)
                      + 4 * (b_all.size + B * two_h))
    cost = pl.CostEstimate(flops=flops, transcendentals=0,
                           bytes_accessed=bytes_accessed)
    out_shape = jax.ShapeDtypeStruct((B, two_h), jnp.float32)

    use_grid = (B % batch_block == 0
                and B // batch_block >= grid_min_blocks
                and batch_block % 8 == 0)

    if use_grid:
        # Large batch: parallel 1-D grid over batch (feeds both TensorCores on
        # v7x, double-buffers activation DMAs); weights stay resident (constant
        # index_map).  Even at batch_block=2048 this is <3 MiB of VMEM.
        out = pl.pallas_call(
            kernel,
            out_shape=out_shape,
            grid=(B // batch_block,),
            in_specs=[
                pl.BlockSpec((batch_block, state_dim), lambda i: (i, 0)),
                pl.BlockSpec((batch_block, action_dim), lambda i: (i, 0)),
                pl.BlockSpec(ws.shape, lambda i: (0, 0)),
                pl.BlockSpec(wa.shape, lambda i: (0, 0)),
                pl.BlockSpec(wmid.shape, lambda i: (0, 0, 0)),
                pl.BlockSpec(b_all.shape, lambda i: (0, 0, 0)),
            ],
            out_specs=pl.BlockSpec((batch_block, two_h), lambda i: (i, 0)),
            compiler_params=pltpu.CompilerParams(
                dimension_semantics=("parallel",)),
            cost_estimate=cost,
        )(state, action, ws, wa, wmid, b_all)
    else:
        # Small / mid batch: whole problem fits comfortably in VMEM, gridless
        # (avoids per-grid-step overhead, which dominates a 128-wide MLP).
        vmem = pl.BlockSpec(memory_space=pltpu.MemorySpace.VMEM)
        out = pl.pallas_call(
            kernel,
            out_shape=out_shape,
            in_specs=[vmem] * 6,
            out_specs=vmem,
            cost_estimate=cost,
        )(state, action, ws, wa, wmid, b_all)

    # q1 lives in lane 0, q2 in lane 1 of the lane-dense slab.
    return out[:, 0:1], out[:, 1:2]


def init_mlp_params(key, layer_sizes):
    """Deterministic init mimicking torch.nn.Linear default (U[-1/sqrt(fan_in), +])."""
    ws, bs = [], []
    for i in range(len(layer_sizes) - 1):
        fan_in, fan_out = layer_sizes[i], layer_sizes[i + 1]
        key, kw, kb = jax.random.split(key, 3)
        bound = 1.0 / (fan_in ** 0.5)
        w = jax.random.uniform(kw, (fan_in, fan_out), jnp.float32, -bound, bound)
        b = jax.random.uniform(kb, (1, fan_out), jnp.float32, -bound, bound)
        ws.append(w)
        bs.append(b)
    return {"w": ws, "b": bs}, key


def _reference_forward(state, action, params1, params2):
    """Pure-JAX reference (mirrors the PyTorch module exactly)."""
    sa = jnp.concatenate([state, action], axis=1)

    def mlp(x, p):
        h = x
        n = len(p["w"])
        for i in range(n):
            h = h @ p["w"][i] + p["b"][i]
            if i < n - 1:
                h = jnp.maximum(h, 0.0)
        return h

    return mlp(sa, params1), mlp(sa, params2)


if __name__ == "__main__":
    # Module config: layers = [state_dim + action_dim] + list(hid_shape)*hid_layers + [1]
    state_dim, action_dim = 12, 4
    hid_shape, hid_layers = (32,), 2
    layer_sizes = [state_dim + action_dim] + list(hid_shape) * hid_layers + [1]

    key = jax.random.PRNGKey(0)
    key, ks, ka = jax.random.split(key, 3)
    B = 8
    state = jax.random.normal(ks, (B, state_dim), dtype=jnp.float32)
    action = jax.random.normal(ka, (B, action_dim), dtype=jnp.float32)

    params1, key = init_mlp_params(key, layer_sizes)
    params2, key = init_mlp_params(key, layer_sizes)
    packed_f32 = pack_double_q_params(params1, params2, state_dim, action_dim)

    # 1) Small batch, f32 -> gridless path, tight tolerance.
    q1, q2 = double_q_critic_forward(state, action, packed_f32)
    jax.block_until_ready((q1, q2))
    r1, r2 = _reference_forward(state, action, params1, params2)
    assert q1.shape == (B, 1) and q2.shape == (B, 1)
    assert jnp.allclose(q1, r1, atol=1e-5, rtol=1e-5)
    assert jnp.allclose(q2, r2, atol=1e-5, rtol=1e-5)

    # 2) Larger batch, f32 -> parallel batch-grid path (>= 2 blocks).
    Bl = 1024
    key, ks2, ka2 = jax.random.split(key, 3)
    state_l = jax.random.normal(ks2, (Bl, state_dim), dtype=jnp.float32)
    action_l = jax.random.normal(ka2, (Bl, action_dim), dtype=jnp.float32)
    q1l, q2l = double_q_critic_forward(state_l, action_l, packed_f32,
                                       batch_block=512)
    jax.block_until_ready((q1l, q2l))
    r1l, r2l = _reference_forward(state_l, action_l, params1, params2)
    assert jnp.allclose(q1l, r1l, atol=1e-5, rtol=1e-5)
    assert jnp.allclose(q2l, r2l, atol=1e-5, rtol=1e-5)

    # 3) bf16 MXU path (f32 accumulation / epilogue) -> relaxed tolerance.
    packed_bf16 = pack_double_q_params(params1, params2, state_dim, action_dim,
                                       weight_dtype=jnp.bfloat16)
    q1b, q2b = double_q_critic_forward(state, action, packed_bf16)
    jax.block_until_ready((q1b, q2b))
    assert jnp.allclose(q1b, r1, atol=5e-2, rtol=5e-2)
    assert jnp.allclose(q2b, r2, atol=5e-2, rtol=5e-2)

    print("KERNEL_OK")
</pallas_src>

<mosaic_0001>
module attributes {stable_mosaic.version = 11 : i64} {
  func.func @kernel(%arg0: memref<8x12xf32, #tpu.memory_space<vmem>>, %arg1: memref<8x4xf32, #tpu.memory_space<vmem>>, %arg2: memref<12x128xf32, #tpu.memory_space<vmem>>, %arg3: memref<4x128xf32, #tpu.memory_space<vmem>>, %arg4: memref<2x128x128xf32, #tpu.memory_space<vmem>>, %arg5: memref<3x1x128xf32, #tpu.memory_space<vmem>>, %arg6: memref<8x128xf32, #tpu.memory_space<vmem>>) attributes {dimension_semantics = [], scalar_prefetch = 0 : i64, scratch_operands = 0 : i64, tpu.core_type = #tpu.core_type<tc>} {
    %c0 = arith.constant 0 : index
    %c0_0 = arith.constant 0 : index
    %0 = vector.load %arg0[%c0, %c0_0] : memref<8x12xf32, #tpu.memory_space<vmem>>, vector<8x12xf32>
    %c0_1 = arith.constant 0 : index
    %c0_2 = arith.constant 0 : index
    %1 = vector.load %arg1[%c0_1, %c0_2] : memref<8x4xf32, #tpu.memory_space<vmem>>, vector<8x4xf32>
    %c0_3 = arith.constant 0 : index
    %c0_4 = arith.constant 0 : index
    %2 = vector.load %arg2[%c0_3, %c0_4] : memref<12x128xf32, #tpu.memory_space<vmem>>, vector<12x128xf32>
    %cst = arith.constant dense<0.000000e+00> : vector<8x128xf32>
    %3 = tpu.matmul %0, %2, %cst {dimension_numbers = #tpu.dot_dimension_numbers<[1], [0], [0], [1], [0, 0, 1, 1], [], []>} : vector<8x12xf32>, vector<12x128xf32>, vector<8x128xf32> -> vector<8x128xf32>
    %c0_5 = arith.constant 0 : index
    %c0_6 = arith.constant 0 : index
    %4 = vector.load %arg3[%c0_5, %c0_6] : memref<4x128xf32, #tpu.memory_space<vmem>>, vector<4x128xf32>
    %cst_7 = arith.constant dense<0.000000e+00> : vector<8x128xf32>
    %5 = tpu.matmul %1, %4, %cst_7 {dimension_numbers = #tpu.dot_dimension_numbers<[1], [0], [0], [1], [0, 0, 1, 1], [], []>} : vector<8x4xf32>, vector<4x128xf32>, vector<8x128xf32> -> vector<8x128xf32>
    %6 = arith.addf %3, %5 : vector<8x128xf32>
    %c0_8 = arith.constant 0 : index
    %c0_9 = arith.constant 0 : index
    %c0_10 = arith.constant 0 : index
    %7 = vector.load %arg5[%c0_8, %c0_9, %c0_10] : memref<3x1x128xf32, #tpu.memory_space<vmem>>, vector<1x1x128xf32>
    %8 = vector.shape_cast %7 : vector<1x1x128xf32> to vector<1x128xf32>
    %9 = vector.broadcast %8 : vector<1x128xf32> to vector<8x128xf32>
    %10 = arith.addf %6, %9 : vector<8x128xf32>
    %cst_11 = arith.constant 0.000000e+00 : f32
    %11 = vector.broadcast %cst_11 : f32 to vector<8x128xf32>
    %12 = arith.maximumf %10, %11 : vector<8x128xf32>
    %c0_12 = arith.constant 0 : index
    %c0_13 = arith.constant 0 : index
    %c0_14 = arith.constant 0 : index
    %13 = vector.load %arg4[%c0_12, %c0_13, %c0_14] : memref<2x128x128xf32, #tpu.memory_space<vmem>>, vector<1x128x128xf32>
    %14 = vector.shape_cast %13 : vector<1x128x128xf32> to vector<128x128xf32>
    %cst_15 = arith.constant dense<0.000000e+00> : vector<8x128xf32>
    %15 = tpu.matmul %12, %14, %cst_15 {dimension_numbers = #tpu.dot_dimension_numbers<[1], [0], [0], [1], [0, 0, 1, 1], [], []>} : vector<8x128xf32>, vector<128x128xf32>, vector<8x128xf32> -> vector<8x128xf32>
    %c1 = arith.constant 1 : index
    %c0_16 = arith.constant 0 : index
    %c0_17 = arith.constant 0 : index
    %16 = vector.load %arg5[%c1, %c0_16, %c0_17] : memref<3x1x128xf32, #tpu.memory_space<vmem>>, vector<1x1x128xf32>
    %17 = vector.shape_cast %16 : vector<1x1x128xf32> to vector<1x128xf32>
    %18 = vector.broadcast %17 : vector<1x128xf32> to vector<8x128xf32>
    %19 = arith.addf %15, %18 : vector<8x128xf32>
    %cst_18 = arith.constant 0.000000e+00 : f32
    %20 = vector.broadcast %cst_18 : f32 to vector<8x128xf32>
    %21 = arith.maximumf %19, %20 : vector<8x128xf32>
    %c1_19 = arith.constant 1 : index
    %c0_20 = arith.constant 0 : index
    %c0_21 = arith.constant 0 : index
    %22 = vector.load %arg4[%c1_19, %c0_20, %c0_21] : memref<2x128x128xf32, #tpu.memory_space<vmem>>, vector<1x128x128xf32>
    %23 = vector.shape_cast %22 : vector<1x128x128xf32> to vector<128x128xf32>
    %cst_22 = arith.constant dense<0.000000e+00> : vector<8x128xf32>
    %24 = tpu.matmul %21, %23, %cst_22 {dimension_numbers = #tpu.dot_dimension_numbers<[1], [0], [0], [1], [0, 0, 1, 1], [], []>} : vector<8x128xf32>, vector<128x128xf32>, vector<8x128xf32> -> vector<8x128xf32>
    %c2 = arith.constant 2 : index
    %c0_23 = arith.constant 0 : index
    %c0_24 = arith.constant 0 : index
    %25 = vector.load %arg5[%c2, %c0_23, %c0_24] : memref<3x1x128xf32, #tpu.memory_space<vmem>>, vector<1x1x128xf32>
    %26 = vector.shape_cast %25 : vector<1x1x128xf32> to vector<1x128xf32>
    %27 = vector.broadcast %26 : vector<1x128xf32> to vector<8x128xf32>
    %28 = arith.addf %24, %27 : vector<8x128xf32>
    %c0_25 = arith.constant 0 : index
    %c0_26 = arith.constant 0 : index
    %29 = vector.load %arg6[%c0_25, %c0_26] : memref<8x128xf32, #tpu.memory_space<vmem>>, vector<8x128xf32>
    tpu.vector_store %arg6[%c0_25, %c0_26], %28 {strides = array<i32>} : memref<8x128xf32, #tpu.memory_space<vmem>>, vector<8x128xf32>,
    return
  }
}

</mosaic_0001>

<bundles_post_ra>
// kernel: tpu_custom_call.1
= control target key start
LH: loop header
LB: loop body
LE: loop exit
PB: predicated region body
PF: predicated region fallthrough
CT: control target
= control target key end

     0   :  { %11 = vsyncpa [#allocation3], 0  ;;  %s818_s0 = inlined_call_operand.hbm [shape: f32[8,12], index: 0, kind: input, shape index: {}]   ;;  %s819_s1 = inlined_call_operand.vmem [shape: f32[8,4], index: 1, kind: input, shape index: {}]   ;;  %s820_s2 = inlined_call_operand.vmem [shape: f32[12,128], index: 2, kind: input, shape index: {}]   ;;  %s821_s3 = inlined_call_operand.vmem [shape: f32[4,128], index: 3, kind: input, shape index: {}]   ;;  %s822_s4 = inlined_call_operand.hbm [shape: f32[2,128,128], index: 4, kind: input, shape index: {}]   ;;  %s823_s5 = inlined_call_operand.vmem [shape: f32[3,1,128], index: 5, kind: input, shape index: {}]   ;;  %s824_s6 = inlined_call_operand.hbm [shape: f32[8,128], index: 6, kind: output, shape index: {}]  }
   0x1   :  { %12 = vsyncpa [#allocation6], 0 }
   0x2   :  { %13 = vsyncpa [#allocation4], 0  ;;  %s689_s21 = smov [#allocation2]   ;;  %s690_s23 = smov [#allocation5]  }
   0x3   :  { %s20_s22 = sshll.u32 %s689_s21, 4  ;;  %s35_s24 = sshll.u32 %s690_s23, 4  ;;  %s21_s22 = int_to_ptr.vmem [resolvable:$true] %s20_s22  ;;  %s733_s24 = int_to_ptr.vmem [resolvable:$true] %s35_s24 }
   0x4   :  { %s617_s27 = scalar_lea.hbm %s818_s0, 128 }
   0x5   :  { %p618_p0 = scmp.ne.s32.totalorder %s818_s0, %s617_s27  ;;  %p621_p1 = scmp.lt.u32.totalorder %s617_s27, %s818_s0 }
   0x7   :  { %p623_p2 = pnand %p621_p1, %p618_p0 }
   0x9   :  { %626 = shalt.err (!%p623_p2)
}
   0xa   :  { %s627_s8 = scalar_lea.vmem %s21_s22, 128  ;;  %p632_p4 = scmp.lt.s32.totalorder %s21_s22, %s21_s22 }
   0xb   :  { %p628_p3 = scmp.ne.s32.totalorder %s21_s22, %s627_s8  ;;  %p633_p5 = scmp.lt.s32.totalorder %s627_s8, %s627_s8 }
   0xd   :  { %p634_p6 = por %p633_p5, %p632_p4 }
   0xf   :  { %p635_p7 = pnand %p634_p6, %p628_p3 }
  0x11   :  { %638 = shalt.err (!%p635_p7)
}
  0x12   :  { %23 = dma.hbm_to_vmem [thread:$0]  %s818_s0, 128, %s21_s22, [#allocation3]  }
  0x13   :  { %s639_s13 = scalar_lea.hbm %s822_s4, 4096 }
  0x14   :  { %p640_p8 = scmp.ne.s32.totalorder %s822_s4, %s639_s13  ;;  %p643_p9 = scmp.lt.u32.totalorder %s639_s13, %s822_s4 }
  0x16   :  { %p645_p10 = pnand %p643_p9, %p640_p8 }
  0x18   :  { %648 = shalt.err (!%p645_p10)
}
  0x19   :  { %s649_s18 = scalar_lea.vmem %s733_s24, 4096  ;;  %p654_p12 = scmp.lt.s32.totalorder %s733_s24, %s733_s24 }
  0x1a   :  { %p650_p11 = scmp.ne.s32.totalorder %s733_s24, %s649_s18  ;;  %p655_p13 = scmp.lt.s32.totalorder %s649_s18, %s649_s18 }
  0x1c   :  { %p656_p0 = por %p655_p13, %p654_p12 }
  0x1e   :  { %p657_p1 = pnand %p656_p0, %p650_p11 }
  0x20   :  { %660 = shalt.err (!%p657_p1)
}
  0x21   :  { %s691_s0 = smov 128   ;;  %s692_s19 = smov 8  }
  0x22   :  { %41 = dma.hbm_to_vmem [thread:$0]  %s822_s4, 4096, %s733_s24, [#allocation6], %s691_s0, %s691_s0, %s692_s19  }
  0x23   :  { %683 = dma.done.wait [#allocation3], 128  }
  0x24   :  { %684 = vsyncadd [#allocation3], 4294967168 }
  0x25   :  { %685 = dma.done.wait [#allocation6], 4096  }
  0x26   :  { %686 = vsyncadd [#allocation6], 4294963200  ;;  %v693_v0 = vmov 0.0|0.0   ;;  %v694_v1 = vmov 0.0   ;;  %vm695_vm0 = vmmov 0   ;;  %vm59_vm1 = vcmask 1043456  }
  0x27   :  { %556 = vmatprep.subr.bf16.mxu1 %v693_v0  ;;  %474 = vmatprep.subr.mxu0 %v694_v1  ;;  %vm696_vm2 = vmmov 1   ;;  %vm55_vm4 = vcmask 31744   ;;  %v52_v2 = vld [vmem:[%s820_s2] sm:$0xff]  ;;  %v53_v3 = vld [vmem:[%s820_s2 + $0x8] sm:$0xf]  ;;  %v220_v8 = vld [vmem:[#allocation5 + $0x8] sm:$0xff] }
  0x28   :  { %476 = vmatprep.mubr.msk.f32.mxu0 %vm695_vm0, %v694_v1  ;;  %483 = vmatprep.mubr.msk.f32.mxu1 %vm695_vm0, %v694_v1  ;;  %vm558_vm3 = vmpackc.low %vm59_vm1, %vm696_vm2  ;;  %v54_v4 = vld [vmem:[%s821_s3] sm:$0xf]  ;;  %v557_v5 = vpack.c.bf16 %v53_v3, %v52_v2  ;;  %v219_v7 = vld [vmem:[#allocation5] sm:$0xff]  ;;  %vm133_vm5 = vcmask 97280   ;;  %s697_s8 = smov [#allocation7]  }
  0x29   :  { %475 = vmatpush3.msk.msra.mxu0 %vm59_vm1, %v54_v4  ;;  %v51_v6 = vld [vmem:[%s819_s1] sm:$0xff]  ;;  %v221_v9 = vld [vmem:[#allocation5 + $0x10] sm:$0xff]  ;;  %v561_v12 = vpack.c.bf16 %v220_v8, %v219_v7  ;;  %v223_v14 = vld [vmem:[#allocation5 + $0x20] sm:$0xff]  ;;  %s416_s9 = sshll.u32 %s697_s8, 4  ;;  %s417_s9 = int_to_ptr.vmem [resolvable:$true] %s416_s9 }
  0x2a   :  { %477 = vmatmul.mubr.msk.f32.vlgmr.msra.gmra.mrb[0].mxu0 %vm55_vm4, %v51_v6  ;;  %560 = vmatprep.subr.bf16.mxu0 %v693_v0  ;;  %v222_v10 = vld [vmem:[#allocation5 + $0x18] sm:$0xff]  ;;  %v224_v15 = vld [vmem:[#allocation5 + $0x28] sm:$0xff]  ;;  %v225_v17 = vld [vmem:[#allocation5 + $0x30] sm:$0xff]  ;;  %s661_s10 = scalar_lea.vmem %s417_s9, 128  ;;  %p666_p3 = scmp.lt.s32.totalorder %s417_s9, %s417_s9 }
  0x2b   :  { %559 = vmatpush3.bf16.msk.msra.mxu1 %vm558_vm3, %v557_v5  ;;  %v50_v11 = vld [vmem:[#allocation2] sm:$0xff]  ;;  %518 = vmatprep.mubr.msk.f32.mxu0 %vm695_vm0, %v694_v1  ;;  %v564_v13 = vpack.c.bf16 %v222_v10, %v221_v9  ;;  %v567_v16 = vpack.c.bf16 %v224_v15, %v223_v14  ;;  %v227_v20 = vld [vmem:[#allocation5 + $0x40] sm:$0xff]  ;;  %v228_v21 = vld [vmem:[#allocation5 + $0x48] sm:$0xff]  ;;  %p662_p2 = scmp.ne.s32.totalorder %s417_s9, %s661_s10  ;;  %p667_p4 = scmp.lt.s32.totalorder %s661_s10, %s661_s10 }
  0x2c   :  { %584 = vmatprep.subr.bf16.mxu1 %v693_v0  ;;  %562 = vmatpush3.bf16.msra.mxu0 %v561_v12  ;;  %v226_v18 = vld [vmem:[#allocation5 + $0x38] sm:$0xff]  ;;  %v573_v22 = vpack.c.bf16 %v228_v21, %v227_v20  ;;  %v229_v23 = vld [vmem:[#allocation5 + $0x50] sm:$0xff]  ;;  %v231_v26 = vld [vmem:[#allocation5 + $0x60] sm:$0xff] }
  0x2d   :  { %563 = vmatprep.subr.bf16.mxu0 %v693_v0  ;;  %v570_v19 = vpack.c.bf16 %v226_v18, %v225_v17  ;;  %v230_v24 = vld [vmem:[#allocation5 + $0x58] sm:$0xff]  ;;  %v232_v27 = vld [vmem:[#allocation5 + $0x68] sm:$0xff]  ;;  %v233_v29 = vld [vmem:[#allocation5 + $0x70] sm:$0xff]  ;;  %p668_p5 = por %p667_p4, %p666_p3 }
  0x2e   :  { %484 = vmatmul.mubr.msk.f32.vlgmr.msra.gmra.mrb[0].mxu1 %vm133_vm5, %v50_v11  ;;  %v576_v25 = vpack.c.bf16 %v230_v24, %v229_v23  ;;  %v579_v28 = vpack.c.bf16 %v232_v27, %v231_v26  ;;  %v234_v30 = vld [vmem:[#allocation5 + $0x78] sm:$0xff]  ;;  %v315_v32 = vld [vmem:[#allocation5 + $0x80] sm:$0xff]  ;;  %v316_v33 = vld [vmem:[#allocation5 + $0x88] sm:$0xff] }
  0x2f   :  { %553 = vmatprep.mubr.msk.f32.mxu1 %vm695_vm0, %v694_v1  ;;  %v582_v31 = vpack.c.bf16 %v234_v30, %v233_v29  ;;  %v317_v34 = vld [vmem:[#allocation5 + $0x90] sm:$0xff]  ;;  %v585_v35 = vpack.c.bf16 %v316_v33, %v315_v32  ;;  %v318_v36 = vld [vmem:[#allocation5 + $0x98] sm:$0xff]  ;;  %v319_v38 = vld [vmem:[#allocation5 + $0xa0] sm:$0xff]  ;;  %p669_p6 = pnand %p668_p5, %p662_p2 }
  0x30   :  { %565 = vmatpush3.bf16.msra.mxu0 %v564_v13  ;;  %v588_v37 = vpack.c.bf16 %v318_v36, %v317_v34  ;;  %v320_v39 = vld [vmem:[#allocation5 + $0xa8] sm:$0xff]  ;;  %v321_v41 = vld [vmem:[#allocation5 + $0xb0] sm:$0xff]  ;;  %v322_v42 = vld [vmem:[#allocation5 + $0xb8] sm:$0xff] }
  0x31   :  { %566 = vmatprep.subr.bf16.mxu0 %v693_v0  ;;  %586 = vmatpush3.bf16.msra.mxu1 %v585_v35  ;;  %v591_v40 = vpack.c.bf16 %v320_v39, %v319_v38  ;;  %v594_v43 = vpack.c.bf16 %v322_v42, %v321_v41  ;;  %v323_v44 = vld [vmem:[#allocation5 + $0xc0] sm:$0xff]  ;;  %v324_v45 = vld [vmem:[#allocation5 + $0xc8] sm:$0xff]  ;;  %v325_v47 = vld [vmem:[#allocation5 + $0xd0] sm:$0xff] }
  0x32   :  { %587 = vmatprep.subr.bf16.mxu1 %v693_v0  ;;  %v597_v46 = vpack.c.bf16 %v324_v45, %v323_v44  ;;  %v326_v48 = vld [vmem:[#allocation5 + $0xd8] sm:$0xff]  ;;  %v327_v50 = vld [vmem:[#allocation5 + $0xe0] sm:$0xff]  ;;  %v328_v51 = vld [vmem:[#allocation5 + $0xe8] sm:$0xff] }
  0x33   :  { %v600_v49 = vpack.c.bf16 %v326_v48, %v325_v47  ;;  %v603_v52 = vpack.c.bf16 %v328_v51, %v327_v50  ;;  %v430_v56 = vld [vmem:[%s823_s5] ss:$0 sm:$0xff]  ;;  %v329_v61 = vld [vmem:[#allocation5 + $0xf0] sm:$0xff]  ;;  %v434_v5 = vld [vmem:[%s823_s5 + $0x2] ss:$0 sm:$0xff] }
  0x34   :  { %568 = vmatpush3.bf16.msra.mxu0 %v567_v16  ;;  %v330_v62 = vld [vmem:[#allocation5 + $0xf8] sm:$0xff] }
  0x35   :  { %569 = vmatprep.subr.bf16.mxu0 %v693_v0  ;;  %589 = vmatpush3.bf16.msra.mxu1 %v588_v37  ;;  %v606_v63 = vpack.c.bf16 %v330_v62, %v329_v61 }
  0x36   :  { %590 = vmatprep.subr.bf16.mxu1 %v693_v0 }
  0x38   :  { %571 = vmatpush3.bf16.msra.mxu0 %v570_v19 }
  0x39   :  { %572 = vmatprep.subr.bf16.mxu0 %v693_v0  ;;  %592 = vmatpush3.bf16.msra.mxu1 %v591_v40 }
  0x3a   :  { %593 = vmatprep.subr.bf16.mxu1 %v693_v0 }
  0x3c   :  { %574 = vmatpush3.bf16.msra.mxu0 %v573_v22 }
  0x3d   :  { %575 = vmatprep.subr.bf16.mxu0 %v693_v0  ;;  %595 = vmatpush3.bf16.msra.mxu1 %v594_v43 }
  0x3e   :  { %596 = vmatprep.subr.bf16.mxu1 %v693_v0 }
  0x40   :  { %577 = vmatpush3.bf16.msra.mxu0 %v576_v25 }
  0x41   :  { %578 = vmatprep.subr.bf16.mxu0 %v693_v0  ;;  %598 = vmatpush3.bf16.msra.mxu1 %v597_v46 }
  0x42   :  { %599 = vmatprep.subr.bf16.mxu1 %v693_v0 }
  0x44   :  { %580 = vmatpush3.bf16.msra.mxu0 %v579_v28 }
  0x45   :  { %581 = vmatprep.subr.bf16.mxu0 %v693_v0  ;;  %601 = vmatpush3.bf16.msra.mxu1 %v600_v49 }
  0x46   :  { %602 = vmatprep.subr.bf16.mxu1 %v693_v0 }
  0x48   :  { %583 = vmatpush3.bf16.msra.mxu0 %v582_v31 }
  0x49   :  { %604 = vmatpush3.bf16.msra.mxu1 %v603_v52 }
  0x4a   :  { %605 = vmatprep.subr.bf16.mxu1 %v693_v0  ;;  %v432_v0 = vld [vmem:[%s823_s5 + $0x1] ss:$0 sm:$0xff] }
  0x4d   :  { %607 = vmatpush3.bf16.msra.mxu1 %v606_v63 }
  0xfd   :  { %v129_v53 = vpop.f32.mrb[0].mxu0 }
  0xfe   :  { %v478_v54 = vpop.f32.mrb[1].mxu0 }
 0x101   :  { %v206_v55 = vpop.f32.mrb[0].mxu1 }
 0x102   :  { %v207_v57 = vadd.f32 %v206_v55, %v129_v53  ;;  %v485_v58 = vpop.f32.mrb[1].mxu1 }
 0x104   :  { %v217_v59 = vadd.f32 %v430_v56, %v207_v57 }
 0x106   :  { %v218_v60 = vmax.f32 %v217_v59, 0.0 }
 0x108   :  { %519 = vmatmul.mubr.f32.vlgmr.msra.gmra.mrb[2].mxu0 %v218_v60 }
 0x1db   :  { %v309_v1 = vpop.f32.mrb[2].mxu0 }
 0x1dc   :  { %v310_v2 = vadd.f32 %v432_v0, %v309_v1  ;;  %v520_v3 = vpop.f32.mrb[3].mxu0 }
 0x1de   :  { %v313_v4 = vmax.f32 %v310_v2, 0.0 }
 0x1e0   :  { %554 = vmatmul.mubr.f32.vlgmr.msra.gmra.mrb[2].mxu1 %v313_v4 }
 0x2b3   :  { %v405_v6 = vpop.f32.mrb[2].mxu1 }
 0x2b4   :  { %v406_v7 = vadd.f32 %v434_v5, %v405_v6  ;;  %v555_v8 = vpop.f32.mrb[3].mxu1 }
 0x2b6   :  { %409 = vst [vmem:[#allocation7] sm:$0xff] %v406_v7 }
 0x2b7   :  { %672 = shalt.err (!%p669_p6)
}
 0x2b8   :  { %s673_s13 = scalar_lea.hbm %s824_s6, 128 }
 0x2b9   :  { %p674_p7 = scmp.ne.s32.totalorder %s824_s6, %s673_s13  ;;  %p677_p8 = scmp.lt.u32.totalorder %s673_s13, %s824_s6 }
 0x2bb   :  { %p679_p9 = pnand %p677_p8, %p674_p7 }
 0x2bd   :  { %682 = shalt.err (!%p679_p9)
}
 0x2be   :  { %419 = dma.vmem_to_hbm [thread:$0]  %s417_s9, 128, %s824_s6, [#allocation4]  }
 0x2bf   :  { %687 = dma.done.wait [#allocation4], 128  }
 0x2c0   :  { %688 = vsyncadd [#allocation4], 4294967168 }
 0x2c1   :  { %423 = vsyncpa [#allocation3], 1 }
 0x2c2   :  { %424 = vsyncpa [#allocation6], 1 }
 0x2c3   :  { %425 = vsyncpa [#allocation4], 1 }

</bundles_post_ra>
